<compile_context>
chip_gen: v7x
topology: tpu7x:2x2x1
jax: 0.10.0
libtpu: 0.0.40
codegen_flags: <defaults>
</compile_context>

<pallas_src>
import jax
import jax.numpy as jnp
from jax.experimental import pallas as pl
from jax.experimental.pallas import tpu as pltpu


def gmf_kernel(u_ref, i_ref, w_ref, b_ref, o_ref):
    # u_ref, i_ref: VMEM (D, TILE_B) f32 gathered embeddings (batch on lanes)
    # w_ref:        VMEM (D, 1)      f32 linear weight column
    # b_ref:        SMEM (1, 1)      f32 linear bias
    # o_ref:        VMEM (1, TILE_B) f32 sigmoid output (lane-dense)
    prod = u_ref[...] * i_ref[...] * w_ref[...]          # VPU, full-lane vregs
    logits = jnp.sum(prod, axis=0, keepdims=True)        # XLU sublane reduce -> (1, TILE_B)
    o_ref[...] = jax.nn.sigmoid(logits + b_ref[0, 0]).astype(o_ref.dtype)


def _round_up(x, m):
    return (x + m - 1) // m * m


def gmf_forward(inputs, user_emb, item_emb, w, b, *, tile_b=None):
    """inputs: (B, 2) integer ids; returns (B, 1) f32 probabilities."""
    inputs = inputs.astype(jnp.int32)
    _, D = user_emb.shape
    B = inputs.shape[0]

    if tile_b is None:
        # VMEM budget: 2 gathered inputs x 2 pipeline buffers x tile_b x D x 4B.
        # Keep it well under v7x's 32 MiB scoped-VMEM default.
        budget_bytes = 8 * 1024 * 1024
        tile_b = budget_bytes // (2 * 2 * D * 4)
        tile_b = max(128, min(4096, (tile_b // 128) * 128))
    tile_b = min(tile_b, _round_up(B, 128))
    b_pad = _round_up(B, tile_b)

    pad = b_pad - B
    u_ids = jnp.pad(inputs[:, 0], (0, pad))
    i_ids = jnp.pad(inputs[:, 1], (0, pad))

    # Gather rows directly into the lane-major (D, B_pad) layout the kernel uses.
    u_t = jnp.take(user_emb.T, u_ids, axis=1)   # (D, B_pad)
    i_t = jnp.take(item_emb.T, i_ids, axis=1)   # (D, B_pad)

    grid = (b_pad // tile_b,)
    out = pl.pallas_call(
        gmf_kernel,
        out_shape=jax.ShapeDtypeStruct((1, b_pad), jnp.float32),
        grid=grid,
        in_specs=[
            pl.BlockSpec((D, tile_b), lambda i: (0, i)),   # user embeddings (lane-major batch)
            pl.BlockSpec((D, tile_b), lambda i: (0, i)),   # item embeddings
            pl.BlockSpec((D, 1), lambda i: (0, 0)),        # linear weight column
            pl.BlockSpec(memory_space=pltpu.SMEM),         # bias scalar
        ],
        out_specs=pl.BlockSpec((1, tile_b), lambda i: (0, i)),
        compiler_params=pltpu.CompilerParams(
            dimension_semantics=("parallel",),             # megacore-shard the batch tiles
        ),
        cost_estimate=pl.CostEstimate(
            flops=3 * b_pad * D + 2 * b_pad,
            transcendentals=b_pad,
            bytes_accessed=(2 * b_pad * D + b_pad + D + 1) * 4,
        ),
    )(u_t, i_t, w, b.reshape(1, 1))

    return out[0, :B].reshape(B, 1)


if __name__ == "__main__":
    num_users, num_items, latent_dim, batch = 32, 48, 32, 8

    key = jax.random.PRNGKey(0)
    k1, k2, k3, k4, k5, k6 = jax.random.split(key, 6)

    # Deterministic parameter init (shapes from GMF.__init__):
    # nn.Embedding default ~ N(0, 1); nn.Linear default ~ U(-1/sqrt(D), 1/sqrt(D)).
    user_emb = jax.random.normal(k1, (num_users, latent_dim), jnp.float32)
    item_emb = jax.random.normal(k2, (num_items, latent_dim), jnp.float32)
    bound = 1.0 / (latent_dim ** 0.5)
    w = jax.random.uniform(k3, (latent_dim, 1), jnp.float32, -bound, bound)
    b = jax.random.uniform(k4, (1,), jnp.float32, -bound, bound)

    # Example inputs: (B, 2) = [user_id, item_id] pairs.
    u_ids = jax.random.randint(k5, (batch,), 0, num_users, dtype=jnp.int32)
    i_ids = jax.random.randint(k6, (batch,), 0, num_items, dtype=jnp.int32)
    inputs = jnp.stack([u_ids, i_ids], axis=1)

    out = gmf_forward(inputs, user_emb, item_emb, w, b)
    out = jax.block_until_ready(out)

    # Pure-JAX reference of the full forward pass (elementwise-sum form of the
    # out_features=1 Linear, so the check is not sensitive to XLA's default
    # reduced-precision matmul on TPU).
    u_g = user_emb[inputs[:, 0]]
    i_g = item_emb[inputs[:, 1]]
    ref = jax.nn.sigmoid(
        jnp.sum(u_g * i_g * w[:, 0], axis=-1, keepdims=True) + b
    )
    assert out.shape == (batch, 1)
    assert jnp.allclose(out, ref, atol=1e-5), "mismatch vs reference"

    print("KERNEL_OK")
</pallas_src>

<mosaic_0001>
module attributes {stable_mosaic.version = 11 : i64} {
  func.func @gmf_kernel(%arg0: i32, %arg1: memref<32x128xf32, #tpu.memory_space<vmem>>, %arg2: memref<32x128xf32, #tpu.memory_space<vmem>>, %arg3: memref<32x1xf32, #tpu.memory_space<vmem>>, %arg4: memref<1x1xf32, #tpu.memory_space<smem>>, %arg5: memref<1x128xf32, #tpu.memory_space<vmem>>) attributes {dimension_semantics = [#tpu.dimension_semantics<parallel>], iteration_bounds = array<i64: 1>, scalar_prefetch = 0 : i64, scratch_operands = 0 : i64, tpu.core_type = #tpu.core_type<tc>, window_params = [{transform_indices = @transform_0, window_bounds = array<i64: 32, 128>}, {transform_indices = @transform_1, window_bounds = array<i64: 32, 128>}, {pipeline_mode = #tpu.pipeline_mode<synchronous>, transform_indices = @transform_2, window_bounds = array<i64: 32, 1>}, {transform_indices = @transform_3, window_bounds = array<i64: 1, 1>}, {transform_indices = @transform_4, window_bounds = array<i64: 1, 128>}]} {
    %c0 = arith.constant 0 : index
    %c0_0 = arith.constant 0 : index
    %0 = vector.load %arg1[%c0, %c0_0] : memref<32x128xf32, #tpu.memory_space<vmem>>, vector<32x128xf32>
    %c0_1 = arith.constant 0 : index
    %c0_2 = arith.constant 0 : index
    %1 = vector.load %arg2[%c0_1, %c0_2] : memref<32x128xf32, #tpu.memory_space<vmem>>, vector<32x128xf32>
    %2 = arith.mulf %0, %1 : vector<32x128xf32>
    %c0_3 = arith.constant 0 : index
    %c0_4 = arith.constant 0 : index
    %3 = vector.load %arg3[%c0_3, %c0_4] : memref<32x1xf32, #tpu.memory_space<vmem>>, vector<32x1xf32>
    %4 = vector.broadcast %3 : vector<32x1xf32> to vector<32x128xf32>
    %5 = arith.mulf %2, %4 : vector<32x128xf32>
    %cst = arith.constant dense<0.000000e+00> : vector<128xf32>
    %6 = vector.multi_reduction <add>, %5, %cst [0] : vector<32x128xf32> to vector<128xf32>
    %7 = vector.shape_cast %6 : vector<128xf32> to vector<1x128xf32>
    %c0_5 = arith.constant 0 : index
    %c0_6 = arith.constant 0 : index
    %8 = memref.load %arg4[%c0_5, %c0_6] : memref<1x1xf32, #tpu.memory_space<smem>>
    %9 = vector.broadcast %8 : f32 to vector<1x128xf32>
    %10 = arith.addf %7, %9 : vector<1x128xf32>
    %11 = arith.negf %10 : vector<1x128xf32>
    %12 = math.exp %11 : vector<1x128xf32>
    %cst_7 = arith.constant 1.000000e+00 : f32
    %13 = vector.broadcast %cst_7 : f32 to vector<1x128xf32>
    %14 = arith.addf %13, %12 : vector<1x128xf32>
    %15 = arith.divf %13, %14 : vector<1x128xf32>
    %c0_8 = arith.constant 0 : index
    %c0_9 = arith.constant 0 : index
    %16 = vector.load %arg5[%c0_8, %c0_9] : memref<1x128xf32, #tpu.memory_space<vmem>>, vector<1x128xf32>
    tpu.vector_store %arg5[%c0_8, %c0_9], %15 {strides = array<i32>} : memref<1x128xf32, #tpu.memory_space<vmem>>, vector<1x128xf32>,
    return
  }
  func.func @transform_0(%arg0: i32) -> (i32, i32) {
    %c0_i32 = arith.constant 0 : i32
    %c0_i32_0 = arith.constant 0 : i32
    return %c0_i32, %arg0 : i32, i32
  }
  func.func @transform_1(%arg0: i32) -> (i32, i32) {
    %c0_i32 = arith.constant 0 : i32
    %c0_i32_0 = arith.constant 0 : i32
    return %c0_i32, %arg0 : i32, i32
  }
  func.func @transform_2(%arg0: i32) -> (i32, i32) {
    %c0_i32 = arith.constant 0 : i32
    %c0_i32_0 = arith.constant 0 : i32
    %c0_i32_1 = arith.constant 0 : i32
    return %c0_i32, %c0_i32_0 : i32, i32
  }
  func.func @transform_3(%arg0: i32) -> (i32, i32) {
    %c0_i32 = arith.constant 0 : i32
    %c0_i32_0 = arith.constant 0 : i32
    %c0_i32_1 = arith.constant 0 : i32
    return %c0_i32, %c0_i32_0 : i32, i32
  }
  func.func @transform_4(%arg0: i32) -> (i32, i32) {
    %c0_i32 = arith.constant 0 : i32
    %c0_i32_0 = arith.constant 0 : i32
    return %c0_i32, %arg0 : i32, i32
  }
}

</mosaic_0001>

<bundles_post_ra>
// kernel: tpu_custom_call.1
= control target key start
LH: loop header
LB: loop body
LE: loop exit
PB: predicated region body
PF: predicated region fallthrough
CT: control target
= control target key end

     0   :  { %10 = vsyncpa [#allocation4], 0  ;;  %s248_s0 = inlined_call_operand.vmem [shape: f32[32,128], index: 0, kind: input, shape index: {}]   ;;  %s249_s1 = inlined_call_operand.hbm [shape: f32[32,128], index: 1, kind: input, shape index: {}]   ;;  %s250_s2 = inlined_call_operand.vmem [shape: f32[32,1], index: 2, kind: input, shape index: {}]   ;;  %s251_s3 = inlined_call_operand.<no memory space> [shape: f32[1,1], index: 3, kind: input, shape index: {}]   ;;  %s252_s4 = inlined_call_operand.hbm [shape: f32[1,128], index: 4, kind: output, shape index: {}]  }
   0x1   :  { %11 = vsyncpa [#allocation5], 0  ;;  %s167_s15 = smov [#allocation3]   ;;  %s119_s19 = scalar_lea.hbm %s249_s1, 512 }
   0x2   :  { %s19_s16 = sshll.u32 %s167_s15, 4  ;;  %p120_p0 = scmp.ne.s32.totalorder %s249_s1, %s119_s19  ;;  %s20_s16 = int_to_ptr.vmem [resolvable:$true] %s19_s16 }
   0x3   :  { %p123_p1 = scmp.lt.u32.totalorder %s119_s19, %s249_s1 }
   0x5   :  { %p125_p2 = pnand %p123_p1, %p120_p0 }
   0x7   :  { %128 = shalt.err (!%p125_p2)
}
   0x8   :  { %s129_s24 = scalar_lea.vmem %s20_s16, 512  ;;  %p134_p4 = scmp.lt.s32.totalorder %s20_s16, %s20_s16 }
   0x9   :  { %p130_p3 = scmp.ne.s32.totalorder %s20_s16, %s129_s24  ;;  %p135_p5 = scmp.lt.s32.totalorder %s129_s24, %s129_s24 }
   0xb   :  { %p136_p6 = por %p135_p5, %p134_p4 }
   0xd   :  { %p137_p7 = pnand %p136_p6, %p130_p3 }
   0xf   :  { %140 = shalt.err (!%p137_p7)
}
  0x10   :  { %s168_s25 = smov 128   ;;  %s169_s26 = smov 8  }
  0x11   :  { %25 = dma.hbm_to_vmem [thread:$0]  %s249_s1, 512, %s20_s16, [#allocation4], %s168_s25, %s168_s25, %s169_s26  }
  0x12   :  { %163 = dma.done.wait [#allocation4], 512  }
  0x13   :  { %164 = vsyncadd [#allocation4], 4294966784  ;;  %v170_v0 = vmov 0   ;;  %v47_v1 = vld [vmem:[%s250_s2 + $0x10] sm:$0xff]  ;;  %v45_v2 = vld [vmem:[%s250_s2] sm:$0xff]  ;;  %v83_v33 = vstv %s251_s3 }
  0x14   :  { %114 = vset.pattern.permute.xlu1 %v170_v0  ;;  %113 = vset.pattern.permute.xlu0 %v170_v0  ;;  %v48_v3 = vld [vmem:[%s250_s2 + $0x18] sm:$0xff]  ;;  %v46_v4 = vld [vmem:[%s250_s2 + $0x8] sm:$0xff]  ;;  %v33_v5 = vld [vmem:[%s248_s0] sm:$0xff] }
  0x15   :  { %61 = vperm.xlu1 %114, %v47_v1   ;;  %51 = vperm.xlu0 %113, %v45_v2   ;;  %v37_v6 = vld [vmem:[#allocation3] sm:$0xff]  ;;  %v34_v7 = vld [vmem:[%s248_s0 + $0x8] sm:$0xff]  ;;  %v35_v10 = vld [vmem:[%s248_s0 + $0x10] sm:$0xff] }
  0x16   :  { %v38_v8 = vld [vmem:[#allocation3 + $0x8] sm:$0xff]  ;;  %v39_v11 = vld [vmem:[#allocation3 + $0x10] sm:$0xff]  ;;  %v41_v13 = vmul.f32 %v37_v6, %v33_v5  ;;  %v36_v15 = vld [vmem:[%s248_s0 + $0x18] sm:$0xff]  ;;  %s171_s0 = smov [#allocation6]  }
  0x17   :  { %v42_v14 = vmul.f32 %v38_v8, %v34_v7  ;;  %v40_v16 = vld [vmem:[#allocation3 + $0x18] sm:$0xff]  ;;  %v43_v17 = vmul.f32 %v39_v11, %v35_v10  ;;  %s98_s19 = sshll.u32 %s171_s0, 4  ;;  %s99_s19 = int_to_ptr.vmem [resolvable:$true] %s98_s19 }
  0x18   :  { %v44_v20 = vmul.f32 %v40_v16, %v36_v15  ;;  %s141_s20 = scalar_lea.vmem %s99_s19, 16  ;;  %s145_s21 = scalar_lea.vmem %s99_s19, 32 }
  0x19   :  { %66 = vperm.xlu1 %114, %v48_v3   ;;  %56 = vperm.xlu0 %113, %v46_v4   ;;  %p142_p8 = scmp.ne.s32.totalorder %s99_s19, %s141_s20  ;;  %p146_p9 = scmp.lt.s32.totalorder %s99_s19, %s99_s19 }
  0x1a   :  { %p147_p10 = scmp.lt.s32.totalorder %s145_s21, %s141_s20 }
  0x1c   :  { %p148_p11 = por %p147_p10, %p146_p9 }
  0x1e   :  { %p149_p12 = pnand %p148_p11, %p142_p8 }
  0x94   :  { %v62_v9 = vpop.permute.xlu1 %61  ;;  %v52_v12 = vpop.permute.xlu0 %51 }
  0x95   :  { %v69_v19 = vmul.f32 %v52_v12, %v41_v13  ;;  %v71_v23 = vmul.f32 %v62_v9, %v43_v17 }
  0x98   :  { %v57_v18 = vpop.permute.xlu0 %56  ;;  %v67_v22 = vpop.permute.xlu1 %66 }
  0x99   :  { %v70_v21 = vmul.f32 %v57_v18, %v42_v14  ;;  %v72_v25 = vmul.f32 %v67_v22, %v44_v20 }
  0x9b   :  { %v73_v24 = vadd.f32 %v70_v21, %v69_v19 }
  0x9d   :  { %v74_v26 = vadd.f32 %v73_v24, %v71_v23 }
  0x9f   :  { %v75_v27 = vadd.f32 %v74_v26, %v72_v25 }
  0xa1   :  { %v76_v28 = vrot.slane %v75_v27, 4 }
  0xa3   :  { %v77_v29 = vadd.f32 %v76_v28, %v75_v27 }
  0xa5   :  { %v78_v30 = vrot.slane %v77_v29, 2 }
  0xa7   :  { %v79_v31 = vadd.f32 %v78_v30, %v77_v29 }
  0xa9   :  { %v80_v32 = vrot.slane %v79_v31, 1 }
  0xab   :  { %v81_v34 = vadd.f32 %v80_v32, %v79_v31 }
  0xad   :  { %v84_v35 = vadd.f32 %v83_v33, %v81_v34 }
  0xaf   :  { %v107_v36 = vmul.f32 -1.442695, %v84_v35 }
  0xb1   :  { %115 = vpow2.f32 %v107_v36 }
  0xbb   :  { %v116_v37 = vpop.eup %115 }
  0xbc   :  { %v88_v38 = vadd.f32 1.0, %v116_v37 }
  0xbe   :  { %117 = vrcp.f32 %v88_v38 }
  0xc8   :  { %v118_v39 = vpop.eup %117 }
  0xc9   :  { %91 = vst [vmem:[#allocation6] sm:$0x1] %v118_v39 }
  0xca   :  { %152 = shalt.err (!%p149_p12)
}
  0xcb   :  { %s153_s23 = scalar_lea.hbm %s252_s4, 16 }
  0xcc   :  { %p154_p13 = scmp.ne.s32.totalorder %s252_s4, %s153_s23  ;;  %p157_p0 = scmp.lt.u32.totalorder %s153_s23, %s252_s4 }
  0xce   :  { %p159_p1 = pnand %p157_p0, %p154_p13 }
  0xd0   :  { %162 = shalt.err (!%p159_p1)
}
  0xd1   :  { %101 = dma.vmem_to_hbm [thread:$0]  %s99_s19, 16, %s252_s4, [#allocation5]  }
  0xd2   :  { %165 = dma.done.wait [#allocation5], 16  }
  0xd3   :  { %166 = vsyncadd [#allocation5], 4294967280 }
  0xd4   :  { %105 = vsyncpa [#allocation4], 1 }
  0xd5   :  { %106 = vsyncpa [#allocation5], 1 }

</bundles_post_ra>
